<compile_context>
chip_gen: v5e
topology: v5e:2x2
jax: 0.10.0
libtpu: 0.0.40
codegen_flags: <defaults>
</compile_context>

<pallas_src>
import jax
import jax.numpy as jnp
from jax.experimental import pallas as pl
from jax.experimental.pallas import tpu as pltpu


def _round_up(a, m):
    return pl.cdiv(a, m) * m


def conv_mlp_kernel(x_ref, w1_ref, b1_ref, w2_ref, b2_ref, o_ref):
    x = x_ref[...]
    # fc1 (1x1 conv == per-token matmul); accumulate in f32 on the MXU.
    h = jnp.dot(x, w1_ref[...], preferred_element_type=jnp.float32)
    h = h + b1_ref[...].astype(jnp.float32)
    # norm: Identity (norm_layer=None default); drop: p=0.0 -> identity.
    h = jnp.maximum(h, 0.0)                                   # ReLU in f32 (VPU)
    # fc2; cast the intermediate to the (bf16) weight dtype for full MXU rate.
    y = jnp.dot(h.astype(w2_ref.dtype), w2_ref[...],
                preferred_element_type=jnp.float32)
    y = y + b2_ref[...].astype(jnp.float32)
    o_ref[...] = y.astype(o_ref.dtype)


def conv_mlp(x, params, *, tm=256, out_dtype=None):
    """ConvMlp forward. x: [B, C_in, H, W] (NCHW) -> [B, C_out, H, W]."""
    B, C_in, Himg, Wimg = x.shape
    w1, b1, w2, b2 = params["w1"], params["b1"], params["w2"], params["b2"]
    assert w1.shape[0] == C_in
    hidden, C_out = w1.shape[1], w2.shape[1]
    assert w2.shape[0] == hidden
    out_dtype = out_dtype or x.dtype

    # NCHW -> token-major [M, C_in] (1x1 conv is a per-pixel linear layer).
    M = B * Himg * Wimg
    x2 = jnp.transpose(x, (0, 2, 3, 1)).reshape(M, C_in)

    # Pad: tokens to a multiple of tm, feature dims to lane-dense 128 multiples.
    M_p = _round_up(M, tm)
    C_in_p = _round_up(C_in, 128)
    H_p = _round_up(hidden, 128)
    C_out_p = _round_up(C_out, 128)

    x2p = jnp.pad(x2, ((0, M_p - M), (0, C_in_p - C_in)))
    w1p = jnp.pad(w1, ((0, C_in_p - C_in), (0, H_p - hidden)))
    b1p = jnp.pad(jnp.reshape(b1, (1, hidden)), ((0, 0), (0, H_p - hidden)))
    w2p = jnp.pad(w2, ((0, H_p - hidden), (0, C_out_p - C_out)))
    b2p = jnp.pad(jnp.reshape(b2, (1, C_out)), ((0, 0), (0, C_out_p - C_out)))

    grid = (M_p // tm,)

    def const_spec(shape):
        # Whole-array block with a constant index_map -> stays VMEM-resident.
        return pl.BlockSpec(shape, lambda i: (0,) * len(shape))

    # Explicit VMEM budget: (pipeline-buffered) weights + double-buffered
    # x/out tiles + f32 intermediates, plus headroom.  Capped to v7x's 64 MiB.
    def nbytes(a):
        return a.size * a.dtype.itemsize

    needed = (2 * (nbytes(w1p) + nbytes(b1p) + nbytes(w2p) + nbytes(b2p))
              + 2 * tm * C_in_p * x2p.dtype.itemsize
              + 2 * tm * C_out_p * jnp.dtype(out_dtype).itemsize
              + 4 * tm * (H_p + C_out_p)               # f32 intermediates
              + (4 << 20))                             # headroom
    vmem_limit = int(min(64 * 1024 * 1024, max(needed, 16 * 1024 * 1024)))

    out2d = pl.pallas_call(
        conv_mlp_kernel,
        out_shape=jax.ShapeDtypeStruct((M_p, C_out_p), out_dtype),
        grid=grid,
        in_specs=[
            pl.BlockSpec((tm, C_in_p), lambda i: (i, 0)),   # x token tile
            const_spec((C_in_p, H_p)),                      # W1
            const_spec((1, H_p)),                           # b1
            const_spec((H_p, C_out_p)),                     # W2
            const_spec((1, C_out_p)),                       # b2
        ],
        out_specs=pl.BlockSpec((tm, C_out_p), lambda i: (i, 0)),
        compiler_params=pltpu.CompilerParams(
            dimension_semantics=("parallel",),
            vmem_limit_bytes=vmem_limit,
        ),
    )(x2p, w1p, b1p, w2p, b2p)

    y = out2d[:M, :C_out].reshape(B, Himg, Wimg, C_out)
    return jnp.transpose(y, (0, 3, 1, 2)).astype(out_dtype)


def init_params(key, in_features, hidden_features=None, out_features=None,
                dtype=jnp.bfloat16):
    """Deterministic stand-in for Conv2d default init; weights stored [in, out]."""
    hidden_features = hidden_features or in_features
    out_features = out_features or in_features
    k1, k2, k3, k4 = jax.random.split(key, 4)

    def kaiming(k, fan_in, shape):
        return jax.random.normal(k, shape, jnp.float32) * jnp.sqrt(2.0 / fan_in)

    def bias(k, fan_in, n):
        bound = 1.0 / jnp.sqrt(jnp.float32(fan_in))
        return jax.random.uniform(k, (n,), jnp.float32, -bound, bound)

    return {
        "w1": kaiming(k1, in_features, (in_features, hidden_features)).astype(dtype),
        "b1": bias(k2, in_features, hidden_features),        # biases kept f32
        "w2": kaiming(k3, hidden_features, (hidden_features, out_features)).astype(dtype),
        "b2": bias(k4, hidden_features, out_features),
    }


def conv_mlp_ref(x, params):
    """Pure-JAX reference (f32 math) mirroring the kernel's storage dtypes."""
    xt = jnp.transpose(x, (0, 2, 3, 1)).astype(jnp.float32)
    w1 = params["w1"].astype(jnp.float32)
    b1 = params["b1"].astype(jnp.float32).reshape(-1)
    w2 = params["w2"].astype(jnp.float32)
    b2 = params["b2"].astype(jnp.float32).reshape(-1)
    h = jnp.maximum(xt @ w1 + b1, 0.0)
    h = h.astype(params["w2"].dtype).astype(jnp.float32)   # mirror in-kernel cast
    y = h @ w2 + b2
    return jnp.transpose(y, (0, 3, 1, 2))


if __name__ == "__main__":
    # Small shapes consistent with ConvMlp's NCHW 1x1-conv forward.
    B, C_in, Himg, Wimg = 2, 4, 16, 16
    hidden = 32
    C_out = C_in                      # out_features defaults to in_features

    key = jax.random.PRNGKey(0)
    kx, kp = jax.random.split(key)
    x = jax.random.normal(kx, (B, C_in, Himg, Wimg), jnp.float32).astype(jnp.bfloat16)
    params = init_params(kp, C_in, hidden, C_out, dtype=jnp.bfloat16)

    out = conv_mlp(x, params, tm=256)      # M = 2*16*16 = 512 tokens -> grid (2,)
    out = jax.block_until_ready(out)
    assert out.shape == (B, C_out, Himg, Wimg)

    ref = conv_mlp_ref(x, params)
    assert jnp.allclose(out.astype(jnp.float32), ref, atol=2e-2, rtol=2e-2), \
        "mismatch vs JAX reference"

    print("KERNEL_OK")
</pallas_src>

<mosaic_0001>
module attributes {stable_mosaic.version = 11 : i64} {
  func.func @conv_mlp_kernel(%arg0: i32, %arg1: memref<256x128xbf16, #tpu.memory_space<vmem>>, %arg2: memref<128x128xbf16, #tpu.memory_space<vmem>>, %arg3: memref<1x128xf32, #tpu.memory_space<vmem>>, %arg4: memref<128x128xbf16, #tpu.memory_space<vmem>>, %arg5: memref<1x128xf32, #tpu.memory_space<vmem>>, %arg6: memref<256x128xbf16, #tpu.memory_space<vmem>>) attributes {dimension_semantics = [#tpu.dimension_semantics<parallel>], iteration_bounds = array<i64: 2>, scalar_prefetch = 0 : i64, scratch_operands = 0 : i64, tpu.core_type = #tpu.core_type<tc>, window_params = [{transform_indices = @transform_0, window_bounds = array<i64: 256, 128>}, {pipeline_mode = #tpu.pipeline_mode<synchronous>, transform_indices = @transform_1, window_bounds = array<i64: 128, 128>}, {pipeline_mode = #tpu.pipeline_mode<synchronous>, transform_indices = @transform_2, window_bounds = array<i64: 1, 128>}, {pipeline_mode = #tpu.pipeline_mode<synchronous>, transform_indices = @transform_3, window_bounds = array<i64: 128, 128>}, {pipeline_mode = #tpu.pipeline_mode<synchronous>, transform_indices = @transform_4, window_bounds = array<i64: 1, 128>}, {transform_indices = @transform_5, window_bounds = array<i64: 256, 128>}]} {
    %c0 = arith.constant 0 : index
    %c0_0 = arith.constant 0 : index
    %0 = vector.load %arg1[%c0, %c0_0] : memref<256x128xbf16, #tpu.memory_space<vmem>>, vector<256x128xbf16>
    %c0_1 = arith.constant 0 : index
    %c0_2 = arith.constant 0 : index
    %1 = vector.load %arg2[%c0_1, %c0_2] : memref<128x128xbf16, #tpu.memory_space<vmem>>, vector<128x128xbf16>
    %cst = arith.constant dense<0.000000e+00> : vector<256x128xf32>
    %2 = tpu.matmul %0, %1, %cst {dimension_numbers = #tpu.dot_dimension_numbers<[1], [0], [0], [1], [0, 0, 1, 1], [], []>} : vector<256x128xbf16>, vector<128x128xbf16>, vector<256x128xf32> -> vector<256x128xf32>
    %c0_3 = arith.constant 0 : index
    %c0_4 = arith.constant 0 : index
    %3 = vector.load %arg3[%c0_3, %c0_4] : memref<1x128xf32, #tpu.memory_space<vmem>>, vector<1x128xf32>
    %4 = vector.broadcast %3 : vector<1x128xf32> to vector<256x128xf32>
    %5 = arith.addf %2, %4 : vector<256x128xf32>
    %cst_5 = arith.constant 0.000000e+00 : f32
    %6 = vector.broadcast %cst_5 : f32 to vector<256x128xf32>
    %7 = arith.maximumf %5, %6 : vector<256x128xf32>
    %8 = arith.truncf %7 : vector<256x128xf32> to vector<256x128xbf16>
    %c0_6 = arith.constant 0 : index
    %c0_7 = arith.constant 0 : index
    %9 = vector.load %arg4[%c0_6, %c0_7] : memref<128x128xbf16, #tpu.memory_space<vmem>>, vector<128x128xbf16>
    %cst_8 = arith.constant dense<0.000000e+00> : vector<256x128xf32>
    %10 = tpu.matmul %8, %9, %cst_8 {dimension_numbers = #tpu.dot_dimension_numbers<[1], [0], [0], [1], [0, 0, 1, 1], [], []>} : vector<256x128xbf16>, vector<128x128xbf16>, vector<256x128xf32> -> vector<256x128xf32>
    %c0_9 = arith.constant 0 : index
    %c0_10 = arith.constant 0 : index
    %11 = vector.load %arg5[%c0_9, %c0_10] : memref<1x128xf32, #tpu.memory_space<vmem>>, vector<1x128xf32>
    %12 = vector.broadcast %11 : vector<1x128xf32> to vector<256x128xf32>
    %13 = arith.addf %10, %12 : vector<256x128xf32>
    %14 = arith.truncf %13 : vector<256x128xf32> to vector<256x128xbf16>
    %c0_11 = arith.constant 0 : index
    %c0_12 = arith.constant 0 : index
    %15 = vector.load %arg6[%c0_11, %c0_12] : memref<256x128xbf16, #tpu.memory_space<vmem>>, vector<256x128xbf16>
    tpu.vector_store %arg6[%c0_11, %c0_12], %14 {strides = array<i32>} : memref<256x128xbf16, #tpu.memory_space<vmem>>, vector<256x128xbf16>,
    return
  }
  func.func @transform_0(%arg0: i32) -> (i32, i32) {
    %c0_i32 = arith.constant 0 : i32
    %c0_i32_0 = arith.constant 0 : i32
    return %arg0, %c0_i32 : i32, i32
  }
  func.func @transform_1(%arg0: i32) -> (i32, i32) {
    %c0_i32 = arith.constant 0 : i32
    %c0_i32_0 = arith.constant 0 : i32
    %c0_i32_1 = arith.constant 0 : i32
    return %c0_i32, %c0_i32_0 : i32, i32
  }
  func.func @transform_2(%arg0: i32) -> (i32, i32) {
    %c0_i32 = arith.constant 0 : i32
    %c0_i32_0 = arith.constant 0 : i32
    %c0_i32_1 = arith.constant 0 : i32
    return %c0_i32, %c0_i32_0 : i32, i32
  }
  func.func @transform_3(%arg0: i32) -> (i32, i32) {
    %c0_i32 = arith.constant 0 : i32
    %c0_i32_0 = arith.constant 0 : i32
    %c0_i32_1 = arith.constant 0 : i32
    return %c0_i32, %c0_i32_0 : i32, i32
  }
  func.func @transform_4(%arg0: i32) -> (i32, i32) {
    %c0_i32 = arith.constant 0 : i32
    %c0_i32_0 = arith.constant 0 : i32
    %c0_i32_1 = arith.constant 0 : i32
    return %c0_i32, %c0_i32_0 : i32, i32
  }
  func.func @transform_5(%arg0: i32) -> (i32, i32) {
    %c0_i32 = arith.constant 0 : i32
    %c0_i32_0 = arith.constant 0 : i32
    return %arg0, %c0_i32 : i32, i32
  }
}

</mosaic_0001>

<bundles_post_ra>
// kernel: tpu_custom_call.1
= control target key start
LH: loop header
LB: loop body
LE: loop exit
PB: predicated region body
PF: predicated region fallthrough
CT: control target
= control target key end

     0   :  { %10 = vsyncpa [#allocation3], 0  ;;  %s1769_s0 = inlined_call_operand.hbm [shape: bf16[512,128], index: 0, kind: input, shape index: {}]   ;;  %s1770_s1 = inlined_call_operand.hbm [shape: bf16[128,128], index: 1, kind: input, shape index: {}]   ;;  %s1771_s2 = inlined_call_operand.vmem [shape: f32[1,128], index: 2, kind: input, shape index: {}]   ;;  %s1772_s3 = inlined_call_operand.hbm [shape: bf16[128,128], index: 3, kind: input, shape index: {}]   ;;  %s1773_s4 = inlined_call_operand.vmem [shape: f32[1,128], index: 4, kind: input, shape index: {}]   ;;  %s1774_s5 = inlined_call_operand.hbm [shape: bf16[512,128], index: 5, kind: output, shape index: {}]  }
   0x1   :  { %12 = vsyncpa [#allocation3 + $0x1], 0 }
   0x2   :  { %13 = vsyncpa [#allocation6], 0 }
   0x3   :  { %14 = vsyncpa [#allocation4], 0 }
   0x4   :  { %16 = vsyncpa [#allocation4 + $0x1], 0  ;;  %s1504_s18 = smov 0   ;;  %s1506_s19 = smov 0  }
   0x5   :  { %s1508_s20 = smov 0   ;;  %s1510_s21 = smov 0  }
   0x6 LB: > { %s1525_s22 = sadd.s32 4294967295, %s1466_s21   ;;  %s942_s23 = sadd.s32 4294967294, %s1466_s21   ;;  %s1466_s21 = sphi %s1510_s21, %s1786_s21   ;;  %s1462_s20 = sphi %s1508_s20, %s1785_s20   ;;  %s1458_s19 = sphi %s1506_s19, %s1784_s19   ;;  %s1454_s18 = sphi %s1504_s18, %s1783_s18  }
   0x7   : > { %p42_p0 = scmp.ne.s32.totalorder %s1458_s19, %s1454_s18  ;;  %p43_p1 = scmp.eq.s32.totalorder %s1525_s22, 0 }
   0x8   : > { %p150_p2 = scmp.eq.s32.totalorder %s1525_s22, 1  ;;  %p156_p3 = scmp.eq.s32.totalorder %s942_s23, 1 }
   0x9   : > { %p1534_p4 = por %p43_p1, %p42_p0  ;;  %p943_p5 = scmp.ge.s32.totalorder %s1466_s21, 1 }
   0xa   : > { %p1539_p6 = por %p156_p3, %p42_p0  ;;  %p163_p7 = scmp.lt.s32.totalorder %s1466_s21, 3 }
   0xb   : > { %s174_s28 = sshll.u32 %s1770_s1, 4  ;;  %s1468_s30 = smov [#allocation5]   ;;  %s175_s28 = int_to_ptr.hbm [resolvable:$true] %s174_s28 }
   0xc   : > { %p1547_p8 = pnand %p943_p5, %p163_p7  ;;  %s176_s6 = sshll.u32 %s1468_s30, 4  ;;  %s177_s6 = int_to_ptr.vmem [resolvable:$true] %s176_s6 }
   0xd   : > { %s191_s9 = sshll.u32 %s1772_s3, 4  ;;  %s1775_s10 = smov 64   ;;  %s192_s9 = int_to_ptr.hbm [resolvable:$true] %s191_s9 }
   0xe   : > { %p1245_p9 = pneg %p1547_p8  ;;  %s1470_s11 = smov 4  }
   0xf   : > { %s1471_s12 = smov [#allocation7]   ;;  %s1566_s14 = sadd.s32 1, %s1466_s21  }
  0x10   : > { %p1246_p10 = pnand %p1245_p9, %p43_p1  ;;  %s193_s13 = sshll.u32 %s1471_s12, 4  ;;  %s194_s13 = int_to_ptr.vmem [resolvable:$true] %s193_s13 }
  0x11   : > { %s29_s15 = sadd.s32 1, %s1462_s20  ;;  %s26_s16 = ssub.s32 %s1466_s21, %s1566_s14 }
  0x12   : > { %1248 = dma.hbm_to_vmem [thread:$0]  (!%p1246_p10), %s175_s28, 1024, %s177_s6, [#allocation6], %s1775_s10, %s1775_s10, %s1470_s11  }
  0x13   : > { %1251 = dma.hbm_to_vmem [thread:$0]  (!%p1246_p10), %s192_s9, 1024, %s194_s13, [#allocation6], %s1775_s10, %s1775_s10, %s1470_s11  }
  0x14   : > { %p36_p12 = scmp.ne.s32.totalorder %s1462_s20, %s1458_s19  ;;  %p27_p13 = scmp.eq.s32.totalorder %s26_s16, 0 }
  0x15   : > { %p37_p0 = scmp.eq.s32.totalorder %s1466_s21, 0  ;;  %p1262_p5 = scmp.lt.s32.totalorder %s1466_s21, 2 }
  0x16   : > { %p1576_p3 = por %p150_p2, %p36_p12  ;;  %s210_s26 = sand.u32 1, %s1462_s20  }
  0x17   : > { %s1582_s23 = scalar_select %p27_p13, %s1462_s20, %s29_s15  }
  0x18   : > { %p38_p7 = por %p37_p0, %p36_p12  ;;  %s947_s27 = sshll.u32 %s210_s26, 7 }
  0x19   : > { %s1088_s28 = sshll.u32 %s1466_s21, 7  ;;  %s214_s8 = scalar_lea.vmem [#allocation2], %s947_s27 }
  0x1a   : > { %s219_s7 = scalar_lea.hbm %s1769_s0, %s1088_s28  ;;  %s222_s9 = sshll.u32 %s214_s8, 4  ;;  %s223_s9 = int_to_ptr.vmem [resolvable:$true] %s222_s9 }
  0x1b   : > { %s220_s12 = sshll.u32 %s219_s7, 4  ;;  %p1589_p2 = pnand %p1262_p5, %p38_p7  ;;  %s221_s12 = int_to_ptr.hbm [resolvable:$true] %s220_s12 }
  0x1c   : > { %s211_s15 = scalar_lea.sflag [#allocation3], %s210_s26  ;;  %s1366_s16 = sshra.s32 %s221_s12, 4  ;;  %s1367_s16 = int_to_ptr.hbm [resolvable:$true] %s1366_s16 }
  0x1d   : > { %s1368_s10 = scalar_lea.hbm %s1367_s16, 128  ;;  %p1370_p10 = pneg %p1589_p2 }
  0x1e   : > { %p1369_p9 = scmp.ne.s32.totalorder %s1367_s16, %s1368_s10  ;;  %s1373_s30 = scalar_lea.hbm %s1769_s0, 256 }
  0x1f   : > { %p1374_p0 = scmp.lt.s32.totalorder %s1367_s16, %s1769_s0  ;;  %p1375_p5 = scmp.lt.s32.totalorder %s1373_s30, %s1368_s10 }
  0x20   : > { %p1371_p12 = pnand %p1370_p10, %p1369_p9 }
  0x21   : > { %p1376_p7 = por %p1375_p5, %p1374_p0 }
  0x22   : > { %p1372_p13 = pneg %p1371_p12 }
  0x24   : > { %p1377_p11 = pnand %p1376_p7, %p1372_p13 }
  0x26   : > { %1380 = shalt.err (!%p1377_p11)
}
  0x27   : > { %s1781_s26 = smov 64   ;;  %234 = sbr.rel (%p1547_p8) target bundleno = 485 (0x1e5), region = 40 }
  0x28   : > { %1255 = dma.hbm_to_vmem [thread:$0]  (!%p1589_p2), %s221_s12, 2048, %s223_s9, %s211_s15, %s1781_s26, %s1781_s26, %s1470_s11  }
  0x29   : > { %s1609_s8 = sand.u32 (!%p1547_p8), 1, %s1458_s19  }
  0x2a   : > { %s951_s10 = sshll.u32 (!%p1547_p8), %s1609_s8, 7  ;;  %s237_s16 = scalar_lea.sflag (!%p1547_p8), [#allocation3], %s1609_s8 }
  0x2b   : > { %s1615_s28 = scalar_lea.vmem (!%p1547_p8), [#allocation2], %s951_s10 }
  0x2c   : > { %1441 = dma.done.wait (%p1534_p4), %s237_s16, 2048  }
  0x2d   : > { %1443 = vsyncadd (%p1534_p4), %s237_s16, 4294965248 }
  0x2e   : > { %1445 = dma.done.wait (%p43_p1), [#allocation6], 2048  }
  0x2f   : > { %1447 = vsyncadd (%p43_p1), [#allocation6], 4294965248  ;;  %v1112_v0 = vld [vmem:[#allocation5 + $0x38] sm:$0xff]  ;;  %v1111_v1 = vld [vmem:[#allocation5 + $0x30] sm:$0xff]  ;;  %s1687_s12 = scalar_lea.vmem [#allocation8], %s951_s10  ;;  %s1121_s13 = sshll.u32 %s1525_s22, 7 }
  0x30   : > { %476 = vmatpush.bf16.msra.mxu0 %v1112_v0  ;;  %1217 = vmatpush.bf16.msra.mxu2 %v1112_v0  ;;  %v1110_v2 = vld [vmem:[#allocation5 + $0x28] sm:$0xff]  ;;  %v1109_v3 = vld [vmem:[#allocation5 + $0x20] sm:$0xff]  ;;  %v1108_v4 = vld [vmem:[#allocation5 + $0x18] sm:$0xff]  ;;  %s846_s30 = scalar_lea.hbm %s1774_s5, %s1121_s13  ;;  %s847_s6 = sshll.u32 %s1687_s12, 4  ;;  %s848_s6 = int_to_ptr.vmem [resolvable:$true] %s847_s6 }
  0x31   : > { %v1107_v5 = vld [vmem:[#allocation5 + $0x10] sm:$0xff]  ;;  %v1106_v6 = vld [vmem:[#allocation5 + $0x8] sm:$0xff]  ;;  %v1105_v7 = vld [vmem:[#allocation5] sm:$0xff]  ;;  %s849_s7 = sshll.u32 %s846_s30, 4  ;;  %s835_s26 = scalar_lea.sflag [#allocation4], %s1609_s8  ;;  %s850_s7 = int_to_ptr.hbm [resolvable:$true] %s849_s7 }
  0x32   : > { %v1089_v8 = vld [vmem:[%s1615_s28] sm:$0xff]  ;;  %v1090_v10 = vld [vmem:[%s1615_s28 + $0x8] sm:$0xff]  ;;  %v1091_v12 = vld [vmem:[%s1615_s28 + $0x10] sm:$0xff]  ;;  %s1410_s10 = sshra.s32 %s850_s7, 4  ;;  %s1416_s24 = scalar_lea.hbm %s1774_s5, 256  ;;  %s1411_s10 = int_to_ptr.hbm [resolvable:$true] %s1410_s10 }
  0x33   : > { %v1097_v9 = vld [vmem:[%s1615_s28 + $0x40] sm:$0xff]  ;;  %v1098_v11 = vld [vmem:[%s1615_s28 + $0x48] sm:$0xff]  ;;  %v1099_v13 = vld [vmem:[%s1615_s28 + $0x50] sm:$0xff]  ;;  %s1412_s22 = scalar_lea.hbm %s1411_s10, 128  ;;  %p1417_p11 = scmp.lt.s32.totalorder %s1411_s10, %s1774_s5 }
  0x34   : > { %477 = vmatpush.bf16.msra.mxu0 %v1111_v1  ;;  %1218 = vmatpush.bf16.msra.mxu2 %v1111_v1  ;;  %v1092_v14 = vld [vmem:[%s1615_s28 + $0x18] sm:$0xff]  ;;  %v1093_v16 = vld [vmem:[%s1615_s28 + $0x20] sm:$0xff]  ;;  %v1094_v19 = vld [vmem:[%s1615_s28 + $0x28] sm:$0xff]  ;;  %p1413_p1 = scmp.ne.s32.totalorder %s1411_s10, %s1412_s22  ;;  %p1418_p2 = scmp.lt.s32.totalorder %s1416_s24, %s1412_s22 }
  0x35   : > { %v1100_v15 = vld [vmem:[%s1615_s28 + $0x58] sm:$0xff]  ;;  %v1101_v17 = vld [vmem:[%s1615_s28 + $0x60] sm:$0xff]  ;;  %v1102_v20 = vld [vmem:[%s1615_s28 + $0x68] sm:$0xff] }
  0x36   : > { %v1120_v18 = vld [vmem:[#allocation7 + $0x38] sm:$0xff]  ;;  %v1119_v21 = vld [vmem:[#allocation7 + $0x30] sm:$0xff]  ;;  %v1118_v22 = vld [vmem:[#allocation7 + $0x28] sm:$0xff]  ;;  %p1414_p4 = pnand %p1413_p1, %p1576_p3  ;;  %p1419_p9 = por %p1418_p2, %p1417_p11 }
  0x37   : > { %681 = vmatpush.bf16.msra.mxu1 %v1120_v18  ;;  %1225 = vmatpush.bf16.msra.mxu3 %v1120_v18  ;;  %v1117_v23 = vld [vmem:[#allocation7 + $0x20] sm:$0xff]  ;;  %v1116_v24 = vld [vmem:[#allocation7 + $0x18] sm:$0xff]  ;;  %v1095_v25 = vld [vmem:[%s1615_s28 + $0x30] sm:$0xff] }
  0x38   : > { %478 = vmatpush.bf16.msra.mxu0 %v1110_v2  ;;  %1219 = vmatpush.bf16.msra.mxu2 %v1110_v2  ;;  %v1103_v26 = vld [vmem:[%s1615_s28 + $0x70] sm:$0xff]  ;;  %v1114_v28 = vld [vmem:[#allocation7 + $0x8] sm:$0xff]  ;;  %v1113_v29 = vld [vmem:[#allocation7] sm:$0xff]  ;;  %p1415_p8 = pneg %p1414_p4 }
  0x39   : > { %v1115_v27 = vld [vmem:[#allocation7 + $0x10] sm:$0xff]  ;;  %v1096_v30 = vld [vmem:[%s1615_s28 + $0x38] sm:$0xff]  ;;  %v1644_v33 = vld [vmem:[%s1771_s2] ss:$0 sm:$0xff] }
  0x3a   : > { %v1104_v31 = vld [vmem:[%s1615_s28 + $0x78] sm:$0xff]  ;;  %p1420_p10 = pnand %p1419_p9, %p1415_p8 }
  0x3b   : > { %682 = vmatpush.bf16.msra.mxu1 %v1119_v21  ;;  %1226 = vmatpush.bf16.msra.mxu3 %v1119_v21 }
  0x3c   : > { %479 = vmatpush.bf16.msra.mxu0 %v1109_v3  ;;  %1220 = vmatpush.bf16.msra.mxu2 %v1109_v3 }
  0x3f   : > { %683 = vmatpush.bf16.msra.mxu1 %v1118_v22  ;;  %1227 = vmatpush.bf16.msra.mxu3 %v1118_v22 }
  0x40   : > { %480 = vmatpush.bf16.msra.mxu0 %v1108_v4  ;;  %1221 = vmatpush.bf16.msra.mxu2 %v1108_v4 }
  0x43   : > { %684 = vmatpush.bf16.msra.mxu1 %v1117_v23  ;;  %1228 = vmatpush.bf16.msra.mxu3 %v1117_v23 }
  0x44   : > { %481 = vmatpush.bf16.msra.mxu0 %v1107_v5  ;;  %1222 = vmatpush.bf16.msra.mxu2 %v1107_v5 }
  0x47   : > { %685 = vmatpush.bf16.msra.mxu1 %v1116_v24  ;;  %1229 = vmatpush.bf16.msra.mxu3 %v1116_v24 }
  0x48   : > { %482 = vmatpush.bf16.msra.mxu0 %v1106_v6  ;;  %1223 = vmatpush.bf16.msra.mxu2 %v1106_v6 }
  0x4b   : > { %686 = vmatpush.bf16.msra.mxu1 %v1115_v27  ;;  %1230 = vmatpush.bf16.msra.mxu3 %v1115_v27 }
  0x4c   : > { %483 = vmatpush.bf16.msra.mxu0 %v1105_v7  ;;  %1224 = vmatpush.bf16.msra.mxu2 %v1105_v7 }
  0x4f   : > { %484 = vmatmul.bf16.vlgmr.msra.gmra.mxu0 %v1089_v8  ;;  %524 = vmatmul.bf16.vlgmr.msra.gmra.mxu2 %v1097_v9 }
  0x50   : > { %687 = vmatpush.bf16.msra.mxu1 %v1114_v28  ;;  %1231 = vmatpush.bf16.msra.mxu3 %v1114_v28 }
  0x54   : > { %688 = vmatpush.bf16.msra.mxu1 %v1113_v29  ;;  %1232 = vmatpush.bf16.msra.mxu3 %v1113_v29 }
  0x5f   : > { %489 = vmatmul.bf16.gmra.mxu0 %v1090_v10  ;;  %529 = vmatmul.bf16.gmra.mxu2 %v1098_v11 }
  0x6f   : > { %494 = vmatmul.bf16.gmra.mxu0 %v1091_v12  ;;  %534 = vmatmul.bf16.gmra.mxu2 %v1099_v13 }
  0x7f   : > { %499 = vmatmul.bf16.gmra.mxu0 %v1092_v14  ;;  %539 = vmatmul.bf16.gmra.mxu2 %v1100_v15 }
  0x8f   : > { %504 = vmatmul.bf16.gmra.mxu0 %v1093_v16  ;;  %544 = vmatmul.bf16.gmra.mxu2 %v1101_v17 }
  0x9f   : > { %509 = vmatmul.bf16.gmra.mxu0 %v1094_v19  ;;  %549 = vmatmul.bf16.gmra.mxu2 %v1102_v20 }
  0xaf   : > { %514 = vmatmul.bf16.gmra.mxu0 %v1095_v25  ;;  %554 = vmatmul.bf16.gmra.mxu2 %v1103_v26 }
  0xbf   : > { %519 = vmatmul.bf16.gmra.mxu0 %v1096_v30  ;;  %559 = vmatmul.bf16.gmra.mxu2 %v1104_v31 }
  0xcc   : > { %v485_v32 = vpop.f32.mrf.mxu0 }
  0xcd   : > { %v486_v34 = vadd.f32 %v1644_v33, %v485_v32 }
  0xcf   : > { %v565_v37 = vmax.f32 %v486_v34, 0.0 }
  0xd2   : > { %v525_v35 = vpop.f32.mrf.mxu2 }
  0xd3   : > { %v526_v40 = vadd.f32 %v1644_v33, %v525_v35 }
  0xd4   : > { %v487_v36 = vpop.f32.mrf.mxu0 }
  0xd5   : > { %v488_v38 = vadd.f32 %v1644_v33, %v487_v36  ;;  %v581_v45 = vmax.f32 %v526_v40, 0.0 }
  0xd7   : > { %v566_v39 = vmax.f32 %v488_v38, 0.0 }
  0xd9   : > { %v597_v41 = vpack.c.bf16 %v566_v39, %v565_v37 }
  0xda   : > { %v527_v42 = vpop.f32.mrf.mxu2 }
  0xdb   : > { %v528_v43 = vadd.f32 %v1644_v33, %v527_v42  ;;  %689 = vmatmul.bf16.vlgmr.msra.gmra.mxu1 %v597_v41 }
  0xdc   : > { %v490_v44 = vpop.f32.mrf.mxu0 }
  0xdd   : > { %v582_v46 = vmax.f32 %v528_v43, 0.0  ;;  %v491_v48 = vadd.f32 %v1644_v33, %v490_v44 }
  0xdf   : > { %v605_v47 = vpack.c.bf16 %v582_v46, %v581_v45  ;;  %v567_v51 = vmax.f32 %v491_v48, 0.0 }
  0xe1   : > { %729 = vmatmul.bf16.vlgmr.msra.gmra.mxu3 %v605_v47 }
  0xe2   : > { %v530_v49 = vpop.f32.mrf.mxu2 }
  0xe3   : > { %v531_v54 = vadd.f32 %v1644_v33, %v530_v49 }
  0xe4   : > { %v492_v50 = vpop.f32.mrf.mxu0 }
  0xe5   : > { %v493_v52 = vadd.f32 %v1644_v33, %v492_v50  ;;  %v583_v59 = vmax.f32 %v531_v54, 0.0 }
  0xe7   : > { %v568_v53 = vmax.f32 %v493_v52, 0.0 }
  0xe9   : > { %v598_v55 = vpack.c.bf16 %v568_v53, %v567_v51 }
  0xea   : > { %v532_v56 = vpop.f32.mrf.mxu2 }
  0xeb   : > { %v533_v57 = vadd.f32 %v1644_v33, %v532_v56  ;;  %694 = vmatmul.bf16.gmra.mxu1 %v598_v55 }
  0xec   : > { %v495_v58 = vpop.f32.mrf.mxu0 }
  0xed   : > { %v584_v60 = vmax.f32 %v533_v57, 0.0  ;;  %v496_v62 = vadd.f32 %v1644_v33, %v495_v58 }
  0xef   : > { %v606_v61 = vpack.c.bf16 %v584_v60, %v583_v59  ;;  %v569_v1 = vmax.f32 %v496_v62, 0.0 }
  0xf1   : > { %734 = vmatmul.bf16.gmra.mxu3 %v606_v61 }
  0xf2   : > { %v535_v63 = vpop.f32.mrf.mxu2 }
  0xf3   : > { %v536_v4 = vadd.f32 %v1644_v33, %v535_v63 }
  0xf4   : > { %v497_v0 = vpop.f32.mrf.mxu0 }
  0xf5   : > { %v498_v2 = vadd.f32 %v1644_v33, %v497_v0  ;;  %v585_v9 = vmax.f32 %v536_v4, 0.0 }
  0xf7   : > { %v570_v3 = vmax.f32 %v498_v2, 0.0 }
  0xf9   : > { %v599_v5 = vpack.c.bf16 %v570_v3, %v569_v1 }
  0xfa   : > { %v537_v6 = vpop.f32.mrf.mxu2 }
  0xfb   : > { %v538_v7 = vadd.f32 %v1644_v33, %v537_v6  ;;  %699 = vmatmul.bf16.gmra.mxu1 %v599_v5 }
  0xfc   : > { %v500_v8 = vpop.f32.mrf.mxu0 }
  0xfd   : > { %v586_v10 = vmax.f32 %v538_v7, 0.0  ;;  %v501_v12 = vadd.f32 %v1644_v33, %v500_v8 }
  0xff   : > { %v607_v11 = vpack.c.bf16 %v586_v10, %v585_v9  ;;  %v571_v15 = vmax.f32 %v501_v12, 0.0 }
 0x101   : > { %739 = vmatmul.bf16.gmra.mxu3 %v607_v11 }
 0x102   : > { %v540_v13 = vpop.f32.mrf.mxu2 }
 0x103   : > { %v541_v18 = vadd.f32 %v1644_v33, %v540_v13 }
 0x104   : > { %v502_v14 = vpop.f32.mrf.mxu0 }
 0x105   : > { %v503_v16 = vadd.f32 %v1644_v33, %v502_v14  ;;  %v587_v23 = vmax.f32 %v541_v18, 0.0 }
 0x107   : > { %v572_v17 = vmax.f32 %v503_v16, 0.0 }
 0x109   : > { %v600_v19 = vpack.c.bf16 %v572_v17, %v571_v15 }
 0x10a   : > { %v542_v20 = vpop.f32.mrf.mxu2 }
 0x10b   : > { %v543_v21 = vadd.f32 %v1644_v33, %v542_v20  ;;  %704 = vmatmul.bf16.gmra.mxu1 %v600_v19  ;;  %v1681_v19 = vld [vmem:[%s1773_s4] ss:$0 sm:$0xff] }
 0x10c   : > { %v505_v22 = vpop.f32.mrf.mxu0 }
 0x10d   : > { %v588_v24 = vmax.f32 %v543_v21, 0.0  ;;  %v506_v26 = vadd.f32 %v1644_v33, %v505_v22 }
 0x10f   : > { %v608_v25 = vpack.c.bf16 %v588_v24, %v587_v23  ;;  %v573_v29 = vmax.f32 %v506_v26, 0.0 }
 0x111   : > { %744 = vmatmul.bf16.gmra.mxu3 %v608_v25 }
 0x112   : > { %v545_v27 = vpop.f32.mrf.mxu2 }
 0x113   : > { %v546_v32 = vadd.f32 %v1644_v33, %v545_v27 }
 0x114   : > { %v507_v28 = vpop.f32.mrf.mxu0 }
 0x115   : > { %v508_v30 = vadd.f32 %v1644_v33, %v507_v28  ;;  %v589_v38 = vmax.f32 %v546_v32, 0.0 }
 0x117   : > { %v574_v31 = vmax.f32 %v508_v30, 0.0 }
 0x119   : > { %v601_v34 = vpack.c.bf16 %v574_v31, %v573_v29 }
 0x11a   : > { %v547_v35 = vpop.f32.mrf.mxu2 }
 0x11b   : > { %v548_v36 = vadd.f32 %v1644_v33, %v547_v35  ;;  %709 = vmatmul.bf16.gmra.mxu1 %v601_v34 }
 0x11c   : > { %v510_v37 = vpop.f32.mrf.mxu0 }
 0x11d   : > { %v590_v39 = vmax.f32 %v548_v36, 0.0  ;;  %v511_v41 = vadd.f32 %v1644_v33, %v510_v37 }
 0x11f   : > { %v609_v40 = vpack.c.bf16 %v590_v39, %v589_v38  ;;  %v575_v44 = vmax.f32 %v511_v41, 0.0 }
 0x121   : > { %749 = vmatmul.bf16.gmra.mxu3 %v609_v40 }
 0x122   : > { %v550_v42 = vpop.f32.mrf.mxu2 }
 0x123   : > { %v551_v47 = vadd.f32 %v1644_v33, %v550_v42 }
 0x124   : > { %v512_v43 = vpop.f32.mrf.mxu0 }
 0x125   : > { %v513_v45 = vadd.f32 %v1644_v33, %v512_v43  ;;  %v591_v52 = vmax.f32 %v551_v47, 0.0 }
 0x127   : > { %v576_v46 = vmax.f32 %v513_v45, 0.0 }
 0x129   : > { %v602_v48 = vpack.c.bf16 %v576_v46, %v575_v44 }
 0x12a   : > { %v552_v49 = vpop.f32.mrf.mxu2 }
 0x12b   : > { %v553_v50 = vadd.f32 %v1644_v33, %v552_v49  ;;  %714 = vmatmul.bf16.gmra.mxu1 %v602_v48 }
 0x12c   : > { %v515_v51 = vpop.f32.mrf.mxu0 }
 0x12d   : > { %v592_v53 = vmax.f32 %v553_v50, 0.0  ;;  %v516_v55 = vadd.f32 %v1644_v33, %v515_v51 }
 0x12f   : > { %v610_v54 = vpack.c.bf16 %v592_v53, %v591_v52  ;;  %v577_v58 = vmax.f32 %v516_v55, 0.0 }
 0x131   : > { %754 = vmatmul.bf16.gmra.mxu3 %v610_v54 }
 0x132   : > { %v555_v56 = vpop.f32.mrf.mxu2 }
 0x133   : > { %v556_v61 = vadd.f32 %v1644_v33, %v555_v56 }
 0x134   : > { %v517_v57 = vpop.f32.mrf.mxu0 }
 0x135   : > { %v518_v59 = vadd.f32 %v1644_v33, %v517_v57  ;;  %v593_v2 = vmax.f32 %v556_v61, 0.0 }
 0x137   : > { %v578_v60 = vmax.f32 %v518_v59, 0.0 }
 0x139   : > { %v603_v62 = vpack.c.bf16 %v578_v60, %v577_v58 }
 0x13a   : > { %v557_v63 = vpop.f32.mrf.mxu2 }
 0x13b   : > { %v558_v0 = vadd.f32 %v1644_v33, %v557_v63  ;;  %719 = vmatmul.bf16.gmra.mxu1 %v603_v62 }
 0x13c   : > { %v520_v1 = vpop.f32.mrf.mxu0 }
 0x13d   : > { %v594_v3 = vmax.f32 %v558_v0, 0.0  ;;  %v521_v5 = vadd.f32 %v1644_v33, %v520_v1 }
 0x13f   : > { %v611_v4 = vpack.c.bf16 %v594_v3, %v593_v2  ;;  %v579_v8 = vmax.f32 %v521_v5, 0.0 }
 0x141   : > { %759 = vmatmul.bf16.gmra.mxu3 %v611_v4 }
 0x142   : > { %v560_v6 = vpop.f32.mrf.mxu2 }
 0x143   : > { %v561_v11 = vadd.f32 %v1644_v33, %v560_v6 }
 0x144   : > { %v522_v7 = vpop.f32.mrf.mxu0 }
 0x145   : > { %v523_v9 = vadd.f32 %v1644_v33, %v522_v7  ;;  %v595_v15 = vmax.f32 %v561_v11, 0.0 }
 0x147   : > { %v580_v10 = vmax.f32 %v523_v9, 0.0 }
 0x149   : > { %v604_v12 = vpack.c.bf16 %v580_v10, %v579_v8 }
 0x14a   : > { %v562_v13 = vpop.f32.mrf.mxu2 }
 0x14b   : > { %v563_v14 = vadd.f32 %v1644_v33, %v562_v13  ;;  %724 = vmatmul.bf16.gmra.mxu1 %v604_v12 }
 0x14d   : > { %v596_v16 = vmax.f32 %v563_v14, 0.0 }
 0x14f   : > { %v612_v17 = vpack.c.bf16 %v596_v16, %v595_v15 }
 0x151   : > { %764 = vmatmul.bf16.gmra.mxu3 %v612_v17 }
 0x158   : > { %v690_v18 = vpop.f32.mrf.mxu1 }
 0x159   : > { %v691_v21 = vadd.f32 %v1681_v19, %v690_v18 }
 0x160   : > { %v692_v20 = vpop.f32.mrf.mxu1 }
 0x161   : > { %v693_v22 = vadd.f32 %v1681_v19, %v692_v20 }
 0x163   : > { %v1125_v23 = vpack.c.bf16 %v693_v22, %v691_v21 }
 0x164   : > { %v730_v24 = vpop.f32.mrf.mxu3 }
 0x165   : > { %1126 = vst [vmem:[%s1687_s12] sm:$0xff] %v1125_v23   ;;  %v731_v26 = vadd.f32 %v1681_v19, %v730_v24 }
 0x168   : > { %v695_v33 = vpop.f32.mrf.mxu1 }
 0x169   : > { %v696_v30 = vadd.f32 %v1681_v19, %v695_v33 }
 0x16c   : > { %v732_v25 = vpop.f32.mrf.mxu3 }
 0x16d   : > { %v733_v27 = vadd.f32 %v1681_v19, %v732_v25 }
 0x16f   : > { %v1165_v28 = vpack.c.bf16 %v733_v27, %v731_v26 }
 0x170   : > { %v697_v29 = vpop.f32.mrf.mxu1 }
 0x171   : > { %1209 = vst [vmem:[%s1687_s12 + $0x40] sm:$0xff] %v1165_v28   ;;  %v698_v31 = vadd.f32 %v1681_v19, %v697_v29 }
 0x173   : > { %v1130_v32 = vpack.c.bf16 %v698_v31, %v696_v30 }
 0x174   : > { %v735_v34 = vpop.f32.mrf.mxu3 }
 0x175   : > { %1202 = vst [vmem:[%s1687_s12 + $0x8] sm:$0xff] %v1130_v32   ;;  %v736_v37 = vadd.f32 %v1681_v19, %v735_v34 }
 0x178   : > { %v700_v35 = vpop.f32.mrf.mxu1 }
 0x179   : > { %v701_v41 = vadd.f32 %v1681_v19, %v700_v35 }
 0x17c   : > { %v737_v36 = vpop.f32.mrf.mxu3 }
 0x17d   : > { %v738_v38 = vadd.f32 %v1681_v19, %v737_v36 }
 0x17f   : > { %v1170_v39 = vpack.c.bf16 %v738_v38, %v736_v37 }
 0x180   : > { %v702_v40 = vpop.f32.mrf.mxu1 }
 0x181   : > { %1210 = vst [vmem:[%s1687_s12 + $0x48] sm:$0xff] %v1170_v39   ;;  %v703_v42 = vadd.f32 %v1681_v19, %v702_v40 }
 0x183   : > { %v1135_v43 = vpack.c.bf16 %v703_v42, %v701_v41 }
 0x184   : > { %v740_v44 = vpop.f32.mrf.mxu3 }
 0x185   : > { %1203 = vst [vmem:[%s1687_s12 + $0x10] sm:$0xff] %v1135_v43   ;;  %v741_v47 = vadd.f32 %v1681_v19, %v740_v44 }
 0x188   : > { %v705_v45 = vpop.f32.mrf.mxu1 }
 0x189   : > { %v706_v51 = vadd.f32 %v1681_v19, %v705_v45 }
 0x18c   : > { %v742_v46 = vpop.f32.mrf.mxu3 }
 0x18d   : > { %v743_v48 = vadd.f32 %v1681_v19, %v742_v46 }
 0x18f   : > { %v1175_v49 = vpack.c.bf16 %v743_v48, %v741_v47 }
 0x190   : > { %v707_v50 = vpop.f32.mrf.mxu1 }
 0x191   : > { %1211 = vst [vmem:[%s1687_s12 + $0x50] sm:$0xff] %v1175_v49   ;;  %v708_v52 = vadd.f32 %v1681_v19, %v707_v50 }
 0x193   : > { %v1140_v53 = vpack.c.bf16 %v708_v52, %v706_v51 }
 0x194   : > { %v745_v54 = vpop.f32.mrf.mxu3 }
 0x195   : > { %1204 = vst [vmem:[%s1687_s12 + $0x18] sm:$0xff] %v1140_v53   ;;  %v746_v57 = vadd.f32 %v1681_v19, %v745_v54 }
 0x198   : > { %v710_v55 = vpop.f32.mrf.mxu1 }
 0x199   : > { %v711_v61 = vadd.f32 %v1681_v19, %v710_v55 }
 0x19c   : > { %v747_v56 = vpop.f32.mrf.mxu3 }
 0x19d   : > { %v748_v58 = vadd.f32 %v1681_v19, %v747_v56 }
 0x19f   : > { %v1180_v59 = vpack.c.bf16 %v748_v58, %v746_v57 }
 0x1a0   : > { %v712_v60 = vpop.f32.mrf.mxu1 }
 0x1a1   : > { %1212 = vst [vmem:[%s1687_s12 + $0x58] sm:$0xff] %v1180_v59   ;;  %v713_v62 = vadd.f32 %v1681_v19, %v712_v60 }
 0x1a3   : > { %v1145_v63 = vpack.c.bf16 %v713_v62, %v711_v61 }
 0x1a4   : > { %v750_v0 = vpop.f32.mrf.mxu3 }
 0x1a5   : > { %1205 = vst [vmem:[%s1687_s12 + $0x20] sm:$0xff] %v1145_v63   ;;  %v751_v3 = vadd.f32 %v1681_v19, %v750_v0 }
 0x1a8   : > { %v715_v1 = vpop.f32.mrf.mxu1 }
 0x1a9   : > { %v716_v7 = vadd.f32 %v1681_v19, %v715_v1 }
 0x1ac   : > { %v752_v2 = vpop.f32.mrf.mxu3 }
 0x1ad   : > { %v753_v4 = vadd.f32 %v1681_v19, %v752_v2 }
 0x1af   : > { %v1185_v5 = vpack.c.bf16 %v753_v4, %v751_v3 }
 0x1b0   : > { %v717_v6 = vpop.f32.mrf.mxu1 }
 0x1b1   : > { %1213 = vst [vmem:[%s1687_s12 + $0x60] sm:$0xff] %v1185_v5   ;;  %v718_v8 = vadd.f32 %v1681_v19, %v717_v6 }
 0x1b3   : > { %v1150_v9 = vpack.c.bf16 %v718_v8, %v716_v7 }
 0x1b4   : > { %v755_v10 = vpop.f32.mrf.mxu3 }
 0x1b5   : > { %1206 = vst [vmem:[%s1687_s12 + $0x28] sm:$0xff] %v1150_v9   ;;  %v756_v13 = vadd.f32 %v1681_v19, %v755_v10 }
 0x1b8   : > { %v720_v11 = vpop.f32.mrf.mxu1 }
 0x1b9   : > { %v721_v17 = vadd.f32 %v1681_v19, %v720_v11 }
 0x1bc   : > { %v757_v12 = vpop.f32.mrf.mxu3 }
 0x1bd   : > { %v758_v14 = vadd.f32 %v1681_v19, %v757_v12 }
 0x1bf   : > { %v1190_v15 = vpack.c.bf16 %v758_v14, %v756_v13 }
 0x1c0   : > { %v722_v16 = vpop.f32.mrf.mxu1 }
 0x1c1   : > { %1214 = vst [vmem:[%s1687_s12 + $0x68] sm:$0xff] %v1190_v15   ;;  %v723_v18 = vadd.f32 %v1681_v19, %v722_v16 }
 0x1c3   : > { %v1155_v20 = vpack.c.bf16 %v723_v18, %v721_v17 }
 0x1c4   : > { %v760_v21 = vpop.f32.mrf.mxu3 }
 0x1c5   : > { %1207 = vst [vmem:[%s1687_s12 + $0x30] sm:$0xff] %v1155_v20   ;;  %v761_v24 = vadd.f32 %v1681_v19, %v760_v21 }
 0x1c8   : > { %v725_v22 = vpop.f32.mrf.mxu1 }
 0x1c9   : > { %v726_v27 = vadd.f32 %v1681_v19, %v725_v22 }
 0x1cc   : > { %v762_v23 = vpop.f32.mrf.mxu3 }
 0x1cd   : > { %v763_v33 = vadd.f32 %v1681_v19, %v762_v23 }
 0x1cf   : > { %v1195_v25 = vpack.c.bf16 %v763_v33, %v761_v24 }
 0x1d0   : > { %v727_v26 = vpop.f32.mrf.mxu1 }
 0x1d1   : > { %1215 = vst [vmem:[%s1687_s12 + $0x70] sm:$0xff] %v1195_v25   ;;  %v728_v28 = vadd.f32 %v1681_v19, %v727_v26 }
 0x1d3   : > { %v1160_v29 = vpack.c.bf16 %v728_v28, %v726_v27 }
 0x1d4   : > { %v765_v30 = vpop.f32.mrf.mxu3 }
 0x1d5   : > { %1208 = vst [vmem:[%s1687_s12 + $0x38] sm:$0xff] %v1160_v29   ;;  %v766_v32 = vadd.f32 %v1681_v19, %v765_v30 }
 0x1dc   : > { %v767_v31 = vpop.f32.mrf.mxu3 }
 0x1dd   : > { %v768_v34 = vadd.f32 %v1681_v19, %v767_v31 }
 0x1df   : > { %v1200_v35 = vpack.c.bf16 %v768_v34, %v766_v32 }
 0x1e1   : > { %1216 = vst [vmem:[%s1687_s12 + $0x78] sm:$0xff] %v1200_v35  }
 0x1e2   : > { %1423 = shalt.err (!%p1420_p10)
}
 0x1e3   : > { %s1472_s8 = smov 64   ;;  %s1473_s9 = smov 4  }
 0x1e4   : > { %1243 = dma.vmem_to_hbm [thread:$0]  (%p1576_p3), %s848_s6, 2048, %s850_s7, %s835_s26, %s1472_s8, %s1472_s8, %s1473_s9  }
 0x1e5 PF: > { %s864_s12 = sand.u32 1, %s1454_s18   ;;  %p1782_p12 = scmp.ge.s32.totalorder %s1466_s21, 2 }
 0x1e6   : > { %s865_s13 = scalar_lea.sflag [#allocation4], %s864_s12 }
 0x1e7   : > { %p1257_p13 = pnand %p1782_p12, %p1539_p6 }
 0x1e9   : > { %p1258_p0 = pneg %p1257_p13 }
 0x1eb   : > { %1449 = dma.done.wait (%p1258_p0), %s865_s13, 2048  }
 0x1ec   : > { %1451 = vsyncadd (%p1258_p0), %s865_s13, 4294965248  ;;  %p19_p5 = scmp.ge.s32.totalorder %s1566_s14, 4   ;;  %s1783_s18 = smov %s1458_s19 }
 0x1ed   : > { %s1784_s19 = smov %s1462_s20  ;;  %s1785_s20 = smov %s1582_s23 }
 0x1ee   : > { %s1786_s21 = smov %s1566_s14  ;;  %21 = sbr.rel (!%p19_p5) target bundleno = 6 (0x6), region = 93 }
 0x1f3   :  { %871 = vsyncpa [#allocation3], 1 }
 0x1f4   :  { %873 = vsyncpa [#allocation3 + $0x1], 1 }
 0x1f5   :  { %874 = vsyncpa [#allocation6], 1 }
 0x1f6   :  { %875 = vsyncpa [#allocation4], 1 }
 0x1f7   :  { %877 = vsyncpa [#allocation4 + $0x1], 1 }

</bundles_post_ra>
